<compile_context>
chip_gen: v5e
topology: v5e:2x2
jax: 0.10.0
libtpu: 0.0.40
codegen_flags: <defaults>
</compile_context>

<pallas_src>
import functools

import jax
import jax.numpy as jnp
from jax.experimental import pallas as pl
from jax.experimental.pallas import tpu as pltpu


def _round_up(x, m):
    return (x + m - 1) // m * m


def _critic_kernel(s_ref, a_ref, w1s_ref, w1a_ref, b1_ref, w2_ref, b2_ref,
                   w3_ref, b3_ref, out_ref):
    # s_ref: (TILE_B, S) f32, a_ref: (TILE_B, A) f32            (streamed)
    # w1s_ref: (S, H_pad) bf16, w1a_ref: (A, H_pad) bf16        (resident)
    # w2_ref: (H_pad, H_pad) bf16, w3_ref: (H_pad, 1) bf16      (resident)
    # b1/b2: (1, H_pad) f32, b3: (1, 1) f32                     (resident)
    xs = s_ref[...].astype(jnp.bfloat16)
    xa = a_ref[...].astype(jnp.bfloat16)

    # fc1: two MXU dots (state part + action part), f32 accumulation.
    h1 = jnp.dot(xs, w1s_ref[...], preferred_element_type=jnp.float32)
    h1 = h1 + jnp.dot(xa, w1a_ref[...], preferred_element_type=jnp.float32)
    h1 = jnp.maximum(h1 + b1_ref[...], 0.0)

    # fc2: MXU dot + bias + ReLU in f32.
    h2 = jnp.dot(h1.astype(jnp.bfloat16), w2_ref[...],
                 preferred_element_type=jnp.float32)
    h2 = jnp.maximum(h2 + b2_ref[...], 0.0)

    # fc3 on the MXU (N=1 column) instead of a VPU/XLU lane reduction.
    q = jnp.dot(h2.astype(jnp.bfloat16), w3_ref[...],
                preferred_element_type=jnp.float32)
    out_ref[...] = (q + b3_ref[...]).astype(out_ref.dtype)


def pack_critic_params(params, state_dim, action_dim, hidden_size):
    """Split fc1 into state/action parts, pad hidden width to 128 lanes and
    cast matmul weights to bf16.  Done once, outside the per-step forward."""
    H_pad = _round_up(hidden_size, 128)

    w1 = params["w1"].astype(jnp.bfloat16)          # (S+A, H)
    w1s = jnp.zeros((state_dim, H_pad), jnp.bfloat16)
    w1s = w1s.at[:, :hidden_size].set(w1[:state_dim])
    w1a = jnp.zeros((action_dim, H_pad), jnp.bfloat16)
    w1a = w1a.at[:, :hidden_size].set(w1[state_dim:])

    w2 = jnp.zeros((H_pad, H_pad), jnp.bfloat16)
    w2 = w2.at[:hidden_size, :hidden_size].set(params["w2"].astype(jnp.bfloat16))

    b1 = jnp.zeros((1, H_pad), jnp.float32).at[0, :hidden_size].set(params["b1"])
    b2 = jnp.zeros((1, H_pad), jnp.float32).at[0, :hidden_size].set(params["b2"])

    w3 = jnp.zeros((H_pad, 1), jnp.bfloat16)
    w3 = w3.at[:hidden_size, 0].set(params["w3"][:, 0].astype(jnp.bfloat16))
    b3 = params["b3"].reshape(1, 1).astype(jnp.float32)

    return {"w1s": w1s, "w1a": w1a, "b1": b1, "w2": w2, "b2": b2,
            "w3": w3, "b3": b3}


def _pick_tiling(B, tile_b):
    """Choose (tile, padded_B).  Keeps tiles a multiple of 8 sublanes and, for
    batches that would otherwise fit in one tile, splits into 2 grid steps
    (when each half is still >= 256 rows) so both v7x TensorCores get work."""
    B8 = _round_up(B, 8)
    if B8 > tile_b:
        return tile_b, _round_up(B8, tile_b)
    if B8 >= 512:
        half = _round_up((B8 + 1) // 2, 8)
        return half, 2 * half
    return B8, B8


@functools.partial(jax.jit, static_argnames=("tile_b",))
def critic_forward(state, action, packed, *, tile_b=2048):
    """state: (B, state_dim) f32, action: (B, action_dim) f32 -> (B, 1) f32."""
    w1s, w1a, b1 = packed["w1s"], packed["w1a"], packed["b1"]
    w2, b2, w3, b3 = packed["w2"], packed["b2"], packed["w3"], packed["b3"]

    B, S = state.shape
    A = action.shape[1]
    H_pad = w2.shape[0]

    tile, B_pad = _pick_tiling(B, tile_b)
    if B_pad != B:
        # Batch-only zero padding (no lane padding, no dtype cast in HBM).
        state = jnp.pad(state, ((0, B_pad - B), (0, 0)))
        action = jnp.pad(action, ((0, B_pad - B), (0, 0)))

    flops = int(2 * B_pad * ((S + A) * H_pad + H_pad * H_pad + H_pad))
    bytes_accessed = int(
        B_pad * (S + A) * 4 + B_pad * 4                 # streamed activations
        + ((S + A) * H_pad + H_pad * H_pad + H_pad) * 2 # bf16 weights
        + (2 * H_pad + 1) * 4)                          # f32 biases

    resident = lambda i: (0, 0)   # weights/biases: same block every grid step
    out = pl.pallas_call(
        _critic_kernel,
        out_shape=jax.ShapeDtypeStruct((B_pad, 1), jnp.float32),
        grid=(B_pad // tile,),
        in_specs=[
            pl.BlockSpec((tile, S), lambda i: (i, 0)),   # state  (streamed)
            pl.BlockSpec((tile, A), lambda i: (i, 0)),   # action (streamed)
            pl.BlockSpec((S, H_pad), resident),          # W1_state
            pl.BlockSpec((A, H_pad), resident),          # W1_action
            pl.BlockSpec((1, H_pad), resident),          # b1
            pl.BlockSpec((H_pad, H_pad), resident),      # W2
            pl.BlockSpec((1, H_pad), resident),          # b2
            pl.BlockSpec((H_pad, 1), resident),          # w3 column
            pl.BlockSpec((1, 1), resident),              # b3
        ],
        out_specs=pl.BlockSpec((tile, 1), lambda i: (i, 0)),
        compiler_params=pltpu.CompilerParams(
            dimension_semantics=("parallel",)),
        cost_estimate=pl.CostEstimate(flops=flops, transcendentals=0,
                                      bytes_accessed=bytes_accessed),
    )(state, action, w1s, w1a, b1, w2, b2, w3, b3)
    return out[:B]


def init_critic_params(key, state_dim, action_dim, hidden_size):
    """Deterministic init mimicking PyTorch nn.Linear (uniform +-1/sqrt(fan_in)).
    Weights stored as (in_features, out_features)."""
    def linear(k, fan_in, fan_out):
        kw, kb = jax.random.split(k)
        bound = 1.0 / jnp.sqrt(fan_in)
        w = jax.random.uniform(kw, (fan_in, fan_out), jnp.float32, -bound, bound)
        b = jax.random.uniform(kb, (fan_out,), jnp.float32, -bound, bound)
        return w, b

    k1, k2, k3 = jax.random.split(key, 3)
    w1, b1 = linear(k1, state_dim + action_dim, hidden_size)
    w2, b2 = linear(k2, hidden_size, hidden_size)
    w3, b3 = linear(k3, hidden_size, 1)
    return {"w1": w1, "b1": b1, "w2": w2, "b2": b2, "w3": w3, "b3": b3}


def critic_reference(state, action, params):
    """Pure-JAX f32 reference for correctness check."""
    x = jnp.concatenate([state, action], axis=1)
    x = jnp.maximum(x @ params["w1"] + params["b1"], 0.0)
    x = jnp.maximum(x @ params["w2"] + params["b2"], 0.0)
    return x @ params["w3"] + params["b3"]


if __name__ == "__main__":
    key = jax.random.PRNGKey(0)
    k_params, k_state, k_action = jax.random.split(key, 3)

    # Small shapes that still exercise batch tiling and hidden-width padding.
    batch = 24
    state_dim = 17
    action_dim = 6
    hidden_size = 64

    params = init_critic_params(k_params, state_dim, action_dim, hidden_size)
    packed = pack_critic_params(params, state_dim, action_dim, hidden_size)

    state = jax.random.normal(k_state, (batch, state_dim), jnp.float32)
    action = jax.random.normal(k_action, (batch, action_dim), jnp.float32)

    q = critic_forward(state, action, packed)
    q = jax.block_until_ready(q)

    q_ref = critic_reference(state, action, params)
    assert q.shape == (batch, 1), q.shape
    # bf16 MXU operands -> tolerance loosened vs the pure-f32 reference.
    assert jnp.allclose(q, q_ref, atol=2e-2, rtol=2e-2), (q, q_ref)

    print("KERNEL_OK")
</pallas_src>

<mosaic_0001>
module attributes {stable_mosaic.version = 11 : i64} {
  func.func @_critic_kernel(%arg0: i32, %arg1: memref<24x17xf32, #tpu.memory_space<vmem>>, %arg2: memref<24x6xf32, #tpu.memory_space<vmem>>, %arg3: memref<17x128xbf16, #tpu.memory_space<vmem>>, %arg4: memref<6x128xbf16, #tpu.memory_space<vmem>>, %arg5: memref<1x128xf32, #tpu.memory_space<vmem>>, %arg6: memref<128x128xbf16, #tpu.memory_space<vmem>>, %arg7: memref<1x128xf32, #tpu.memory_space<vmem>>, %arg8: memref<128x1xbf16, #tpu.memory_space<vmem>>, %arg9: memref<1x1xf32, #tpu.memory_space<vmem>>, %arg10: memref<24x1xf32, #tpu.memory_space<vmem>>) attributes {dimension_semantics = [#tpu.dimension_semantics<parallel>], iteration_bounds = array<i64: 1>, scalar_prefetch = 0 : i64, scratch_operands = 0 : i64, tpu.core_type = #tpu.core_type<tc>, window_params = [{transform_indices = @transform_0, window_bounds = array<i64: 24, 17>}, {transform_indices = @transform_1, window_bounds = array<i64: 24, 6>}, {pipeline_mode = #tpu.pipeline_mode<synchronous>, transform_indices = @transform_2, window_bounds = array<i64: 17, 128>}, {pipeline_mode = #tpu.pipeline_mode<synchronous>, transform_indices = @transform_3, window_bounds = array<i64: 6, 128>}, {pipeline_mode = #tpu.pipeline_mode<synchronous>, transform_indices = @transform_4, window_bounds = array<i64: 1, 128>}, {pipeline_mode = #tpu.pipeline_mode<synchronous>, transform_indices = @transform_5, window_bounds = array<i64: 128, 128>}, {pipeline_mode = #tpu.pipeline_mode<synchronous>, transform_indices = @transform_6, window_bounds = array<i64: 1, 128>}, {pipeline_mode = #tpu.pipeline_mode<synchronous>, transform_indices = @transform_7, window_bounds = array<i64: 128, 1>}, {pipeline_mode = #tpu.pipeline_mode<synchronous>, transform_indices = @transform_8, window_bounds = array<i64: 1, 1>}, {transform_indices = @transform_9, window_bounds = array<i64: 24, 1>}]} {
    %c0 = arith.constant 0 : index
    %c0_0 = arith.constant 0 : index
    %0 = vector.load %arg1[%c0, %c0_0] : memref<24x17xf32, #tpu.memory_space<vmem>>, vector<24x17xf32>
    %1 = arith.truncf %0 : vector<24x17xf32> to vector<24x17xbf16>
    %c0_1 = arith.constant 0 : index
    %c0_2 = arith.constant 0 : index
    %2 = vector.load %arg2[%c0_1, %c0_2] : memref<24x6xf32, #tpu.memory_space<vmem>>, vector<24x6xf32>
    %3 = arith.truncf %2 : vector<24x6xf32> to vector<24x6xbf16>
    %c0_3 = arith.constant 0 : index
    %c0_4 = arith.constant 0 : index
    %4 = vector.load %arg3[%c0_3, %c0_4] : memref<17x128xbf16, #tpu.memory_space<vmem>>, vector<17x128xbf16>
    %cst = arith.constant dense<0.000000e+00> : vector<24x128xf32>
    %5 = tpu.matmul %1, %4, %cst {dimension_numbers = #tpu.dot_dimension_numbers<[1], [0], [0], [1], [0, 0, 1, 1], [], []>} : vector<24x17xbf16>, vector<17x128xbf16>, vector<24x128xf32> -> vector<24x128xf32>
    %c0_5 = arith.constant 0 : index
    %c0_6 = arith.constant 0 : index
    %6 = vector.load %arg4[%c0_5, %c0_6] : memref<6x128xbf16, #tpu.memory_space<vmem>>, vector<6x128xbf16>
    %cst_7 = arith.constant dense<0.000000e+00> : vector<24x128xf32>
    %7 = tpu.matmul %3, %6, %cst_7 {dimension_numbers = #tpu.dot_dimension_numbers<[1], [0], [0], [1], [0, 0, 1, 1], [], []>} : vector<24x6xbf16>, vector<6x128xbf16>, vector<24x128xf32> -> vector<24x128xf32>
    %8 = arith.addf %5, %7 : vector<24x128xf32>
    %c0_8 = arith.constant 0 : index
    %c0_9 = arith.constant 0 : index
    %9 = vector.load %arg5[%c0_8, %c0_9] : memref<1x128xf32, #tpu.memory_space<vmem>>, vector<1x128xf32>
    %10 = vector.broadcast %9 : vector<1x128xf32> to vector<24x128xf32>
    %11 = arith.addf %8, %10 : vector<24x128xf32>
    %cst_10 = arith.constant 0.000000e+00 : f32
    %12 = vector.broadcast %cst_10 : f32 to vector<24x128xf32>
    %13 = arith.maximumf %11, %12 : vector<24x128xf32>
    %14 = arith.truncf %13 : vector<24x128xf32> to vector<24x128xbf16>
    %c0_11 = arith.constant 0 : index
    %c0_12 = arith.constant 0 : index
    %15 = vector.load %arg6[%c0_11, %c0_12] : memref<128x128xbf16, #tpu.memory_space<vmem>>, vector<128x128xbf16>
    %cst_13 = arith.constant dense<0.000000e+00> : vector<24x128xf32>
    %16 = tpu.matmul %14, %15, %cst_13 {dimension_numbers = #tpu.dot_dimension_numbers<[1], [0], [0], [1], [0, 0, 1, 1], [], []>} : vector<24x128xbf16>, vector<128x128xbf16>, vector<24x128xf32> -> vector<24x128xf32>
    %c0_14 = arith.constant 0 : index
    %c0_15 = arith.constant 0 : index
    %17 = vector.load %arg7[%c0_14, %c0_15] : memref<1x128xf32, #tpu.memory_space<vmem>>, vector<1x128xf32>
    %18 = vector.broadcast %17 : vector<1x128xf32> to vector<24x128xf32>
    %19 = arith.addf %16, %18 : vector<24x128xf32>
    %cst_16 = arith.constant 0.000000e+00 : f32
    %20 = vector.broadcast %cst_16 : f32 to vector<24x128xf32>
    %21 = arith.maximumf %19, %20 : vector<24x128xf32>
    %22 = arith.truncf %21 : vector<24x128xf32> to vector<24x128xbf16>
    %c0_17 = arith.constant 0 : index
    %c0_18 = arith.constant 0 : index
    %23 = vector.load %arg8[%c0_17, %c0_18] : memref<128x1xbf16, #tpu.memory_space<vmem>>, vector<128x1xbf16>
    %cst_19 = arith.constant dense<0.000000e+00> : vector<24x1xf32>
    %24 = tpu.matmul %22, %23, %cst_19 {dimension_numbers = #tpu.dot_dimension_numbers<[1], [0], [0], [1], [0, 0, 1, 1], [], []>} : vector<24x128xbf16>, vector<128x1xbf16>, vector<24x1xf32> -> vector<24x1xf32>
    %c0_20 = arith.constant 0 : index
    %c0_21 = arith.constant 0 : index
    %25 = vector.load %arg9[%c0_20, %c0_21] : memref<1x1xf32, #tpu.memory_space<vmem>>, vector<1x1xf32>
    %26 = vector.broadcast %25 : vector<1x1xf32> to vector<24x1xf32>
    %27 = arith.addf %24, %26 : vector<24x1xf32>
    %c0_22 = arith.constant 0 : index
    %c0_23 = arith.constant 0 : index
    %28 = vector.load %arg10[%c0_22, %c0_23] : memref<24x1xf32, #tpu.memory_space<vmem>>, vector<24x1xf32>
    tpu.vector_store %arg10[%c0_22, %c0_23], %27 {strides = array<i32>} : memref<24x1xf32, #tpu.memory_space<vmem>>, vector<24x1xf32>,
    return
  }
  func.func @transform_0(%arg0: i32) -> (i32, i32) {
    %c0_i32 = arith.constant 0 : i32
    %c0_i32_0 = arith.constant 0 : i32
    return %arg0, %c0_i32 : i32, i32
  }
  func.func @transform_1(%arg0: i32) -> (i32, i32) {
    %c0_i32 = arith.constant 0 : i32
    %c0_i32_0 = arith.constant 0 : i32
    return %arg0, %c0_i32 : i32, i32
  }
  func.func @transform_2(%arg0: i32) -> (i32, i32) {
    %c0_i32 = arith.constant 0 : i32
    %c0_i32_0 = arith.constant 0 : i32
    %c0_i32_1 = arith.constant 0 : i32
    return %c0_i32, %c0_i32_0 : i32, i32
  }
  func.func @transform_3(%arg0: i32) -> (i32, i32) {
    %c0_i32 = arith.constant 0 : i32
    %c0_i32_0 = arith.constant 0 : i32
    %c0_i32_1 = arith.constant 0 : i32
    return %c0_i32, %c0_i32_0 : i32, i32
  }
  func.func @transform_4(%arg0: i32) -> (i32, i32) {
    %c0_i32 = arith.constant 0 : i32
    %c0_i32_0 = arith.constant 0 : i32
    %c0_i32_1 = arith.constant 0 : i32
    return %c0_i32, %c0_i32_0 : i32, i32
  }
  func.func @transform_5(%arg0: i32) -> (i32, i32) {
    %c0_i32 = arith.constant 0 : i32
    %c0_i32_0 = arith.constant 0 : i32
    %c0_i32_1 = arith.constant 0 : i32
    return %c0_i32, %c0_i32_0 : i32, i32
  }
  func.func @transform_6(%arg0: i32) -> (i32, i32) {
    %c0_i32 = arith.constant 0 : i32
    %c0_i32_0 = arith.constant 0 : i32
    %c0_i32_1 = arith.constant 0 : i32
    return %c0_i32, %c0_i32_0 : i32, i32
  }
  func.func @transform_7(%arg0: i32) -> (i32, i32) {
    %c0_i32 = arith.constant 0 : i32
    %c0_i32_0 = arith.constant 0 : i32
    %c0_i32_1 = arith.constant 0 : i32
    return %c0_i32, %c0_i32_0 : i32, i32
  }
  func.func @transform_8(%arg0: i32) -> (i32, i32) {
    %c0_i32 = arith.constant 0 : i32
    %c0_i32_0 = arith.constant 0 : i32
    %c0_i32_1 = arith.constant 0 : i32
    return %c0_i32, %c0_i32_0 : i32, i32
  }
  func.func @transform_9(%arg0: i32) -> (i32, i32) {
    %c0_i32 = arith.constant 0 : i32
    %c0_i32_0 = arith.constant 0 : i32
    return %arg0, %c0_i32 : i32, i32
  }
}

</mosaic_0001>

<bundles_post_ra>
// kernel: critic_forward.1
= control target key start
LH: loop header
LB: loop body
LE: loop exit
PB: predicated region body
PF: predicated region fallthrough
CT: control target
= control target key end

     0   :  { %s656_s0 = inlined_call_operand.vmem [shape: f32[24,17], index: 0, kind: input, shape index: {}]   ;;  %s657_s1 = inlined_call_operand.vmem [shape: f32[24,6], index: 1, kind: input, shape index: {}]   ;;  %s658_s2 = inlined_call_operand.vmem [shape: bf16[17,128], index: 2, kind: input, shape index: {}]   ;;  %s659_s3 = inlined_call_operand.vmem [shape: bf16[6,128], index: 3, kind: input, shape index: {}]   ;;  %s660_s4 = inlined_call_operand.hbm [shape: f32[1,128], index: 4, kind: input, shape index: {}]   ;;  %s661_s5 = inlined_call_operand.vmem [shape: bf16[128,128], index: 5, kind: input, shape index: {}]   ;;  %s662_s6 = inlined_call_operand.hbm [shape: f32[1,128], index: 6, kind: input, shape index: {}]   ;;  %s663_s7 = inlined_call_operand.vmem [shape: bf16[128,1], index: 7, kind: input, shape index: {}]   ;;  %s664_s8 = inlined_call_operand.<no memory space> [shape: f32[1,1], index: 8, kind: input, shape index: {}]   ;;  %s665_s9 = inlined_call_operand.vmem [shape: f32[24,1], index: 9, kind: output, shape index: {}]  }
   0x1   :  { %v14_v0 = vstv %s664_s8 }
   0x2   :  { %15 = vst [vmem:[#allocation2] sm:$0x1] %v14_v0 }
   0x3   :  { %16 = vsyncpa [#allocation4], 0  ;;  %s31_s13 = sshll.u32 %s660_s4, 4  ;;  %s32_s13 = int_to_ptr.hbm [resolvable:$true] %s31_s13 }
   0x4   :  { %17 = vsyncpa [#allocation6], 0  ;;  %s508_s14 = smov [#allocation3]   ;;  %s44_s18 = sshll.u32 %s662_s6, 4  ;;  %s45_s18 = int_to_ptr.hbm [resolvable:$true] %s44_s18 }
   0x5   :  { %s33_s15 = sshll.u32 %s508_s14, 4  ;;  %s509_s19 = smov [#allocation5]   ;;  %s34_s15 = int_to_ptr.vmem [resolvable:$true] %s33_s15 }
   0x6   :  { %36 = dma.hbm_to_vmem [thread:$0]  %s32_s13, 16, %s34_s15, [#allocation4]  }
   0x7   :  { %s46_s20 = sshll.u32 %s509_s19, 4  ;;  %s47_s20 = int_to_ptr.vmem [resolvable:$true] %s46_s20 }
   0x8   :  { %49 = dma.hbm_to_vmem [thread:$0]  %s45_s18, 16, %s47_s20, [#allocation6]  }
   0x9   :  { %504 = dma.done.wait [#allocation4], 16  }
   0xa   :  { %505 = vsyncadd [#allocation4], 4294967280 }
   0xb   :  { %506 = dma.done.wait [#allocation6], 16  }
   0xc   :  { %507 = vsyncadd [#allocation6], 4294967280  ;;  %vm84_vm0 = vcmask 1042432   ;;  %v76_v1 = vld [vmem:[%s659_s3] sm:$0x7]  ;;  %v69_v3 = vld [vmem:[%s657_s1 + $0x8] sm:$0xff] }
   0xd   :  { %v68_v2 = vld [vmem:[%s657_s1] sm:$0xff]  ;;  %vm122_vm1 = vcmask 1040384   ;;  %v86_v4 = vsel %vm84_vm0, %v76_v1, 0  ;;  %v75_v6 = vld [vmem:[%s658_s2 + $0x8] sm:$0x1]  ;;  %vm77_vm2 = vcmask 48128  }
   0xe   :  { %v71_v5 = vpack.c.bf16 %v69_v3, %v68_v2  ;;  %95 = vmatpush.bf16.msra.mxu0 %v86_v4  ;;  %v111_v7 = vunpack.c.l.b16 %v75_v6  ;;  %v510_v8 = vmov 0   ;;  %v425_v10 = vld [vmem:[%s661_s5 + $0x38] sm:$0xff]  ;;  %v424_v13 = vld [vmem:[%s661_s5 + $0x30] sm:$0xff]  ;;  %v417_v14 = vld [vmem:[%s658_s2] sm:$0xff]  ;;  %vm115_vm3 = vcmask 138240  }
   0xf   :  { %v124_v9 = vsel %vm122_vm1, 65535, %v510_v8  ;;  %434 = vmatpush.bf16.msra.mxu2 %v425_v10  ;;  %v63_v15 = vld [vmem:[%s656_s0] sm:$0xff]  ;;  %v64_v16 = vld [vmem:[%s656_s0 + $0x8] sm:$0xff]  ;;  %v70_v18 = vld [vmem:[%s657_s1 + $0x10] sm:$0xff]  ;;  %vm335_vm4 = vcmask 7168  }
  0x10   :  { %v113_v11 = vpack.c.b16 %v111_v7, %v111_v7  ;;  %v66_v17 = vpack.c.bf16 %v64_v16, %v63_v15  ;;  %v72_v19 = vpack.c.bf16 %v70_v18, %v70_v18  ;;  %v65_v20 = vld [vmem:[%s656_s0 + $0x10] sm:$0xff]  ;;  %v423_v22 = vld [vmem:[%s661_s5 + $0x28] sm:$0xff]  ;;  %v422_v23 = vld [vmem:[%s661_s5 + $0x20] sm:$0xff] }
  0x11   :  { %345 = vmatmul.msk.bf16.vlgmr.msra.gmra.mxu0 %vm77_vm2, %v71_v5  ;;  %v67_v21 = vpack.c.bf16 %v65_v20, %v65_v20  ;;  %v421_v24 = vld [vmem:[%s661_s5 + $0x18] sm:$0xff]  ;;  %v420_v25 = vld [vmem:[%s661_s5 + $0x10] sm:$0xff]  ;;  %v419_v26 = vld [vmem:[%s661_s5 + $0x8] sm:$0xff] }
  0x12   :  { %v126_v12 = vand.u32 %v124_v9, %v113_v11  ;;  %226 = vmatpush.bf16.msrb.mxu0 %v425_v10  ;;  %v418_v27 = vld [vmem:[%s661_s5] sm:$0xff]  ;;  %v433_v29 = vld [vmem:[%s663_s7 + $0x38] sm:$0xff]  ;;  %v432_v30 = vld [vmem:[%s663_s7 + $0x30] sm:$0xff] }
  0x13   :  { %435 = vmatpush.bf16.msra.mxu2 %v424_v13  ;;  %442 = vmatpush.bf16.msra.mxu3 %v433_v29  ;;  %v431_v32 = vld [vmem:[%s663_s7 + $0x28] sm:$0xff]  ;;  %v430_v34 = vld [vmem:[%s663_s7 + $0x20] sm:$0xff]  ;;  %v429_v52 = vld [vmem:[%s663_s7 + $0x18] sm:$0xff] }
  0x14   :  { %134 = vmatpush.bf16.msra.mxu1 %v126_v12  ;;  %v453_v36 = vld [vmem:[#allocation3] ss:$0 sm:$0xff]  ;;  %v428_v53 = vld [vmem:[%s663_s7 + $0x10] sm:$0xff]  ;;  %v427_v54 = vld [vmem:[%s663_s7 + $0x8] sm:$0xff] }
  0x15   :  { %v426_v55 = vld [vmem:[%s663_s7] sm:$0xff] }
  0x16   :  { %227 = vmatpush.bf16.msrb.mxu0 %v424_v13  ;;  %v454_v57 = vld [vmem:[#allocation5] ss:$0 sm:$0xff]  ;;  %v455_v5 = vld [vmem:[#allocation2] ss:$0 sm:$0xff] }
  0x17   :  { %436 = vmatpush.bf16.msra.mxu2 %v423_v22  ;;  %443 = vmatpush.bf16.msra.mxu3 %v432_v30 }
  0x18   :  { %135 = vmatpush.bf16.msra.mxu1 %v417_v14 }
  0x1a   :  { %228 = vmatpush.bf16.msrb.mxu0 %v423_v22 }
  0x1b   :  { %351 = vmatmul.msk.bf16.vlgmr.msra.gmra.mxu1 %vm115_vm3, %v66_v17  ;;  %437 = vmatpush.bf16.msra.mxu2 %v422_v23 }
  0x1c   :  { %317 = vmatpush.bf16.msrb.mxu1 %v433_v29  ;;  %444 = vmatpush.bf16.msra.mxu3 %v431_v32 }
  0x1e   :  { %229 = vmatpush.bf16.msrb.mxu0 %v422_v23 }
  0x1f   :  { %438 = vmatpush.bf16.msra.mxu2 %v421_v24 }
  0x20   :  { %318 = vmatpush.bf16.msrb.mxu1 %v432_v30  ;;  %445 = vmatpush.bf16.msra.mxu3 %v430_v34 }
  0x21   :  { %346 = vmatmul.msk.bf16.gmra.mxu0 %vm77_vm2, %v72_v19 }
  0x22   :  { %230 = vmatpush.bf16.msrb.mxu0 %v421_v24 }
  0x23   :  { %439 = vmatpush.bf16.msra.mxu2 %v420_v25 }
  0x24   :  { %319 = vmatpush.bf16.msrb.mxu1 %v431_v32  ;;  %446 = vmatpush.bf16.msra.mxu3 %v429_v52 }
  0x26   :  { %231 = vmatpush.bf16.msrb.mxu0 %v420_v25 }
  0x27   :  { %440 = vmatpush.bf16.msra.mxu2 %v419_v26 }
  0x28   :  { %320 = vmatpush.bf16.msrb.mxu1 %v430_v34  ;;  %447 = vmatpush.bf16.msra.mxu3 %v428_v53 }
  0x2a   :  { %232 = vmatpush.bf16.msrb.mxu0 %v419_v26 }
  0x2b   :  { %352 = vmatmul.msk.bf16.gmra.mxu1 %vm115_vm3, %v67_v21  ;;  %441 = vmatpush.bf16.msra.mxu2 %v418_v27 }
  0x2c   :  { %321 = vmatpush.bf16.msrb.mxu1 %v429_v52  ;;  %448 = vmatpush.bf16.msra.mxu3 %v427_v54 }
  0x2e   :  { %233 = vmatpush.bf16.msrb.mxu0 %v418_v27 }
  0x30   :  { %322 = vmatpush.bf16.msrb.mxu1 %v428_v53  ;;  %449 = vmatpush.bf16.msra.mxu3 %v426_v55 }
  0x34   :  { %323 = vmatpush.bf16.msrb.mxu1 %v427_v54 }
  0x38   :  { %324 = vmatpush.bf16.msrb.mxu1 %v426_v55 }
  0x8e   :  { %v97_v28 = vpop.f32.mrf.mxu0 }
  0x96   :  { %v99_v31 = vpop.f32.mrf.mxu0 }
  0x98   :  { %v137_v33 = vpop.f32.mrf.mxu1 }
  0x99   :  { %v138_v35 = vadd.f32 %v137_v33, %v97_v28 }
  0x9b   :  { %v150_v39 = vadd.f32 %v453_v36, %v138_v35 }
  0x9d   :  { %v153_v42 = vmax.f32 %v150_v39, 0.0 }
  0x9e   :  { %v102_v37 = vpop.f32.mrf.mxu0 }
  0xa0   :  { %v139_v38 = vpop.f32.mrf.mxu1 }
  0xa1   :  { %v140_v40 = vadd.f32 %v139_v38, %v99_v31 }
  0xa3   :  { %v151_v41 = vadd.f32 %v453_v36, %v140_v40 }
  0xa5   :  { %v154_v43 = vmax.f32 %v151_v41, 0.0 }
  0xa6   :  { %v104_v44 = vpop.f32.mrf.mxu0 }
  0xa7   :  { %v156_v45 = vpack.c.bf16 %v154_v43, %v153_v42 }
  0xa8   :  { %v142_v46 = vpop.f32.mrf.mxu1 }
  0xa9   :  { %v143_v47 = vadd.f32 %v142_v46, %v102_v37  ;;  %234 = vmatmul.bf16.vlgmr.msrb.gmra.mxu0 %v156_v45 }
  0xab   :  { %v152_v48 = vadd.f32 %v453_v36, %v143_v47 }
  0xad   :  { %v155_v49 = vmax.f32 %v152_v48, 0.0 }
  0xaf   :  { %v157_v50 = vpack.c.bf16 %v155_v49, %v155_v49 }
  0xb0   :  { %v144_v51 = vpop.f32.mrf.mxu1 }
  0xb1   :  { %239 = vmatmul.bf16.vlgmr.msra.gmra.mxu2 %v157_v50 }
 0x126   :  { %v235_v56 = vpop.f32.mrf.mxu0 }
 0x127   :  { %v236_v58 = vadd.f32 %v454_v57, %v235_v56 }
 0x129   :  { %v244_v61 = vmax.f32 %v236_v58, 0.0 }
 0x12e   :  { %v237_v59 = vpop.f32.mrf.mxu0 }
 0x12f   :  { %v238_v60 = vadd.f32 %v454_v57, %v237_v59 }
 0x131   :  { %v245_v62 = vmax.f32 %v238_v60, 0.0 }
 0x133   :  { %v247_v63 = vpack.c.bf16 %v245_v62, %v244_v61 }
 0x134   :  { %v240_v0 = vpop.f32.mrf.mxu2 }
 0x135   :  { %v241_v1 = vadd.f32 %v454_v57, %v240_v0  ;;  %325 = vmatmul.bf16.vlgmr.msrb.gmra.mxu1 %v247_v63 }
 0x137   :  { %v246_v2 = vmax.f32 %v241_v1, 0.0 }
 0x139   :  { %v248_v3 = vpack.c.bf16 %v246_v2, %v246_v2 }
 0x13b   :  { %330 = vmatmul.bf16.vlgmr.msra.gmra.mxu3 %v248_v3 }
 0x13c   :  { %v242_v4 = vpop.f32.mrf.mxu2 }
 0x1b2   :  { %v326_v6 = vpop.f32.mrf.mxu1 }
 0x1b3   :  { %v327_v7 = vadd.f32 %v455_v5, %v326_v6 }
 0x1b5   :  { %336 = vst.msk [vmem:[%s665_s9] sm:$0xff] %vm335_vm4, %v327_v7 }
 0x1ba   :  { %v328_v8 = vpop.f32.mrf.mxu1 }
 0x1bb   :  { %v329_v9 = vadd.f32 %v455_v5, %v328_v8 }
 0x1bd   :  { %337 = vst.msk [vmem:[%s665_s9 + $0x8] sm:$0xff] %vm335_vm4, %v329_v9 }
 0x1be   :  { %v331_v10 = vpop.f32.mrf.mxu3 }
 0x1bf   :  { %v332_v11 = vadd.f32 %v455_v5, %v331_v10 }
 0x1c1   :  { %338 = vst.msk [vmem:[%s665_s9 + $0x10] sm:$0xff] %vm335_vm4, %v332_v11 }
 0x1c6   :  { %v333_v12 = vpop.f32.mrf.mxu3 }
 0x1c7   :  { %343 = vsyncpa [#allocation4], 1 }
 0x1c8   :  { %344 = vsyncpa [#allocation6], 1 }

</bundles_post_ra>
